<compile_context>
chip_gen: v6e
topology: v6e:2x2x1
jax: 0.10.0
libtpu: 0.0.40
codegen_flags: <defaults>
</compile_context>

<pallas_src>
import jax
import jax.numpy as jnp
from jax.experimental import pallas as pl
from jax.experimental.pallas import tpu as pltpu


def _round_up(x, m):
    return ((x + m - 1) // m) * m


def _fc_kernel(feats_ref, wt_ref, b_ref, out_ref):
    # feats_ref: (TM, in_size)   wt_ref: (in_size, W_PAD)   b_ref: (1, out_size) f32
    # out_ref:   (TM, out_size)
    acc = jnp.dot(feats_ref[...], wt_ref[...], preferred_element_type=jnp.float32)
    out_size = out_ref.shape[-1]
    # Narrow store: slice the f32 accumulator to the real output width, add the
    # f32 bias, cast once.  (Do NOT reduce over the full acc block: rows past N
    # in a ragged last tile hold padded/stale data and are masked on store.)
    out_ref[...] = (acc[:, :out_size] + b_ref[...]).astype(out_ref.dtype)


def fc_layer_forward(feats, weight, bias, *, tile_m=4096):
    """FCLayer.forward: returns (feats, x) with x = feats @ weight.T + bias."""
    n, in_size = feats.shape
    out_size = weight.shape[0]

    # One-time pre-transpose of the weight; pad its (tiny) output dim to a full
    # 128-lane vreg so the MXU matmul operand is lane-dense.  Grid-invariant
    # block -> loaded into VMEM exactly once.
    w_pad = _round_up(out_size, 128)
    w_t = jnp.pad(weight.T.astype(feats.dtype), ((0, 0), (0, w_pad - out_size)))
    # Keep bias in f32; it is added to the f32 accumulator inside the kernel.
    b2 = bias.reshape(1, out_size).astype(jnp.float32)

    # Large row tiles amortize per-step pipeline overhead (~0.35 us), but cap
    # at ceil(n/2) rounded to a sublane multiple so the parallel grid has at
    # least 2 blocks (both v7x TensorCores get work).
    tm = max(8, min(tile_m, _round_up(pl.cdiv(n, 2), 8)))
    grid = (pl.cdiv(n, tm),)

    # VMEM budget from the actual footprint: double-buffered feats/out tiles,
    # resident weight/bias, one f32 accumulator tile, plus margin.
    itemsize = feats.dtype.itemsize
    vmem_bytes = (
        2 * tm * in_size * itemsize          # feats tile (double-buffered)
        + 2 * tm * out_size * itemsize       # out tile   (double-buffered)
        + 2 * in_size * w_pad * itemsize     # weight (grid-invariant, 2 bufs max)
        + 2 * out_size * 4                   # bias
        + tm * w_pad * 4                     # f32 accumulator
    )
    vmem_bytes = int(min(vmem_bytes + (4 << 20), 48 << 20))

    x = pl.pallas_call(
        _fc_kernel,
        out_shape=jax.ShapeDtypeStruct((n, out_size), feats.dtype),
        grid=grid,
        in_specs=[
            pl.BlockSpec((tm, in_size), lambda i: (i, 0)),
            pl.BlockSpec((in_size, w_pad), lambda i: (0, 0)),   # grid-invariant
            pl.BlockSpec((1, out_size), lambda i: (0, 0)),      # grid-invariant
        ],
        out_specs=pl.BlockSpec((tm, out_size), lambda i: (i, 0)),
        compiler_params=pltpu.CompilerParams(
            dimension_semantics=("parallel",),
            vmem_limit_bytes=vmem_bytes,
        ),
    )(feats, w_t, b2)

    return feats, x


if __name__ == "__main__":
    # Small shapes consistent with FCLayer: N instances x in_size features.
    N, IN_SIZE, OUT_SIZE = 64, 32, 1

    key = jax.random.PRNGKey(0)
    k_feats, k_w, k_b = jax.random.split(key, 3)

    feats = jax.random.normal(k_feats, (N, IN_SIZE), dtype=jnp.float32)

    # Deterministic param init mimicking torch.nn.Linear's uniform(-1/sqrt(in), 1/sqrt(in))
    bound = 1.0 / (IN_SIZE ** 0.5)
    weight = jax.random.uniform(k_w, (OUT_SIZE, IN_SIZE), minval=-bound, maxval=bound,
                                dtype=jnp.float32)
    bias = jax.random.uniform(k_b, (OUT_SIZE,), minval=-bound, maxval=bound,
                              dtype=jnp.float32)

    feats_out, x = fc_layer_forward(feats, weight, bias)
    jax.block_until_ready((feats_out, x))

    # Reference check against plain JAX (same math as torch.nn.Linear).
    x_ref = feats @ weight.T + bias
    assert feats_out.shape == (N, IN_SIZE)
    assert x.shape == (N, OUT_SIZE)
    assert jnp.allclose(x, x_ref, atol=1e-5, rtol=1e-5)
    assert jnp.array_equal(feats_out, feats)

    print("KERNEL_OK")
</pallas_src>

<mosaic_0001>
module attributes {stable_mosaic.version = 11 : i64} {
  func.func @_fc_kernel(%arg0: i32, %arg1: memref<32x32xf32, #tpu.memory_space<vmem>>, %arg2: memref<32x128xf32, #tpu.memory_space<vmem>>, %arg3: memref<1x1xf32, #tpu.memory_space<vmem>>, %arg4: memref<32x1xf32, #tpu.memory_space<vmem>>) attributes {dimension_semantics = [#tpu.dimension_semantics<parallel>], iteration_bounds = array<i64: 2>, scalar_prefetch = 0 : i64, scratch_operands = 0 : i64, tpu.core_type = #tpu.core_type<tc>, window_params = [{transform_indices = @transform_0, window_bounds = array<i64: 32, 32>}, {pipeline_mode = #tpu.pipeline_mode<synchronous>, transform_indices = @transform_1, window_bounds = array<i64: 32, 128>}, {pipeline_mode = #tpu.pipeline_mode<synchronous>, transform_indices = @transform_2, window_bounds = array<i64: 1, 1>}, {transform_indices = @transform_3, window_bounds = array<i64: 32, 1>}]} {
    %c0 = arith.constant 0 : index
    %c0_0 = arith.constant 0 : index
    %0 = vector.load %arg1[%c0, %c0_0] : memref<32x32xf32, #tpu.memory_space<vmem>>, vector<32x32xf32>
    %c0_1 = arith.constant 0 : index
    %c0_2 = arith.constant 0 : index
    %1 = vector.load %arg2[%c0_1, %c0_2] : memref<32x128xf32, #tpu.memory_space<vmem>>, vector<32x128xf32>
    %cst = arith.constant dense<0.000000e+00> : vector<32x128xf32>
    %2 = tpu.matmul %0, %1, %cst {dimension_numbers = #tpu.dot_dimension_numbers<[1], [0], [0], [1], [0, 0, 1, 1], [], []>} : vector<32x32xf32>, vector<32x128xf32>, vector<32x128xf32> -> vector<32x128xf32>
    %3 = vector.extract_strided_slice %2 {offsets = [0, 0], sizes = [32, 1], strides = [1, 1]} : vector<32x128xf32> to vector<32x1xf32>
    %c0_3 = arith.constant 0 : index
    %c0_4 = arith.constant 0 : index
    %4 = vector.load %arg3[%c0_3, %c0_4] : memref<1x1xf32, #tpu.memory_space<vmem>>, vector<1x1xf32>
    %5 = vector.broadcast %4 : vector<1x1xf32> to vector<32x1xf32>
    %6 = arith.addf %3, %5 : vector<32x1xf32>
    %c0_5 = arith.constant 0 : index
    %c0_6 = arith.constant 0 : index
    %7 = vector.load %arg4[%c0_5, %c0_6] : memref<32x1xf32, #tpu.memory_space<vmem>>, vector<32x1xf32>
    tpu.vector_store %arg4[%c0_5, %c0_6], %6 {strides = array<i32>} : memref<32x1xf32, #tpu.memory_space<vmem>>, vector<32x1xf32>,
    return
  }
  func.func @transform_0(%arg0: i32) -> (i32, i32) {
    %c0_i32 = arith.constant 0 : i32
    %c0_i32_0 = arith.constant 0 : i32
    return %arg0, %c0_i32 : i32, i32
  }
  func.func @transform_1(%arg0: i32) -> (i32, i32) {
    %c0_i32 = arith.constant 0 : i32
    %c0_i32_0 = arith.constant 0 : i32
    %c0_i32_1 = arith.constant 0 : i32
    return %c0_i32, %c0_i32_0 : i32, i32
  }
  func.func @transform_2(%arg0: i32) -> (i32, i32) {
    %c0_i32 = arith.constant 0 : i32
    %c0_i32_0 = arith.constant 0 : i32
    %c0_i32_1 = arith.constant 0 : i32
    return %c0_i32, %c0_i32_0 : i32, i32
  }
  func.func @transform_3(%arg0: i32) -> (i32, i32) {
    %c0_i32 = arith.constant 0 : i32
    %c0_i32_0 = arith.constant 0 : i32
    return %arg0, %c0_i32 : i32, i32
  }
}

</mosaic_0001>

<bundles_post_ra>
// kernel: tpu_custom_call.1
= control target key start
LH: loop header
LB: loop body
LE: loop exit
PB: predicated region body
PF: predicated region fallthrough
CT: control target
= control target key end

     0   :  { %s439_s14 = smov 0   ;;  %s468_s0 = inlined_call_operand.vmem [shape: f32[64,32], index: 0, kind: input, shape index: {}]   ;;  %s469_s1 = inlined_call_operand.vmem [shape: f32[32,128], index: 1, kind: input, shape index: {}]   ;;  %s470_s2 = inlined_call_operand.<no memory space> [shape: f32[1,1], index: 2, kind: input, shape index: {}]   ;;  %s471_s3 = inlined_call_operand.vmem [shape: f32[64,1], index: 3, kind: output, shape index: {}]  }
   0x1   :  { %v8_v0 = vstv %s470_s2 }
   0x2   :  { %9 = vst [vmem:[#allocation2] sm:$0x1] %v8_v0 }
   0x3 LB: > { %s354_s15 = sadd.s32 4294967295, %s414_s14   ;;  %p358_p0 = scmp.ge.s32.totalorder %s414_s14, 1  ;;  %s414_s14 = sphi %s439_s14, %s15_s14  }
   0x4   : > { %p140_p1 = scmp.lt.s32.totalorder %s414_s14, 3 }
   0x6   : > { %p141_p2 = pnand %p358_p0, %p140_p1 }
   0x7   : > { %s359_s19 = sshll.u32 (!%p141_p2), %s354_s15, 2 }
   0x8   : > { %144 = sbr.rel (%p141_p2) target bundleno = 221 (0xdd), region = 32  ;;  %p165_p3 = scmp.lt.s32.totalorder (!%p141_p2), %s359_s19, 7 }
   0xd   : > { %v183_v1 = vld [vmem:[%s469_s1 + $0x18] sm:$0xff]  ;;  %v182_v2 = vld [vmem:[%s469_s1 + $0x10] sm:$0xff]  ;;  %v181_v3 = vld [vmem:[%s469_s1 + $0x8] sm:$0xff]  ;;  %s473_s19 = smov (!%p165_p3, %s359_s19), 7  ;;  %vm184_vm0 = vcmask 261120   ;;  %vm293_vm1 = vcmask 7168  }
   0xe   : > { %378 = vmatprep.subr.mxu0 %v183_v1  ;;  %392 = vmatprep.subr.mxu1 %v183_v1  ;;  %v180_v4 = vld [vmem:[%s469_s1] sm:$0xff]  ;;  %s360_s24 = sshll.u32 %s473_s19, 3 }
   0xf   : > { %379 = vmatpush3.msra.mxu0 %v183_v1  ;;  %396 = vmatpush3.msra.mxu1 %v183_v1  ;;  %s168_s27 = scalar_lea.vmem %s468_s0, %s360_s24  ;;  %v367_v11 = vld [vmem:[#allocation2] ss:$0 sm:$0xff]  ;;  %s174_s30 = scalar_lea.vmem %s471_s3, %s360_s24 }
  0x10   : > { %380 = vmatprep.subr.mxu0 %v182_v2  ;;  %393 = vmatprep.subr.mxu1 %v182_v2  ;;  %v176_v5 = vld [vmem:[%s168_s27] sm:$0xff]  ;;  %v178_v6 = vld [vmem:[%s168_s27 + $0x10] sm:$0xff]  ;;  %v177_v7 = vld [vmem:[%s168_s27 + $0x8] sm:$0xff] }
  0x11   : > { %381 = vmatpush3.msra.mxu0 %v182_v2  ;;  %397 = vmatpush3.msra.mxu1 %v182_v2  ;;  %v179_v8 = vld [vmem:[%s168_s27 + $0x18] sm:$0xff] }
  0x12   : > { %382 = vmatprep.subr.mxu0 %v181_v3  ;;  %394 = vmatprep.subr.mxu1 %v181_v3 }
  0x13   : > { %383 = vmatpush3.msra.mxu0 %v181_v3  ;;  %398 = vmatpush3.msra.mxu1 %v181_v3 }
  0x14   : > { %384 = vmatprep.subr.mxu0 %v180_v4  ;;  %395 = vmatprep.subr.mxu1 %v180_v4 }
  0x15   : > { %385 = vmatpush3.msra.mxu0 %v180_v4  ;;  %399 = vmatpush3.msra.mxu1 %v180_v4 }
  0x16   : > { %386 = vmatprep.mubr.msk.f32.mxu0 %vm184_vm0, %v176_v5  ;;  %389 = vmatprep.mubr.msk.f32.mxu1 %vm184_vm0, %v178_v6 }
  0x17   : > { %387 = vmatmul.mubr.msk.f32.vlgmr.msra.gmra.mxu0 %vm184_vm0, %v177_v7  ;;  %390 = vmatmul.mubr.msk.f32.vlgmr.msra.gmra.mxu1 %vm184_vm0, %v179_v8 }
  0xd7   : > { %v388_v9 = vpop.f32.mrf.mxu0  ;;  %v391_v10 = vpop.f32.mrf.mxu1 }
  0xd8   : > { %v290_v15 = vadd.f32 %v388_v9, %v367_v11  ;;  %v292_v17 = vadd.f32 %v391_v10, %v367_v11 }
  0xd9   : > { %v263_v12 = vpop.f32.mrf.mxu0  ;;  %v273_v13 = vpop.f32.mrf.mxu1 }
  0xda   : > { %v289_v14 = vadd.f32 %v367_v11, %v263_v12  ;;  %v291_v16 = vadd.f32 %v367_v11, %v273_v13  ;;  %295 = vst.msk [vmem:[%s174_s30 + $0x8] sm:$0xff] %vm293_vm1, %v290_v15  ;;  %297 = vst.msk [vmem:[%s174_s30 + $0x18] sm:$0xff] %vm293_vm1, %v292_v17 }
  0xdc   : > { %294 = vst.msk [vmem:[%s174_s30] sm:$0xff] %vm293_vm1, %v289_v14  ;;  %296 = vst.msk [vmem:[%s174_s30 + $0x10] sm:$0xff] %vm293_vm1, %v291_v16 }
  0xdd PF: > { %s15_s14 = sadd.s32 1, %s414_s14  }
  0xde   : > { %p12_p4 = scmp.ge.s32.totalorder %s15_s14, 4  }
  0xe0   :  { %14 = sbr.rel (!%p12_p4) target bundleno = 3 (0x3), region = 62 }

</bundles_post_ra>
